<compile_context>
chip_gen: v6e
topology: v6e:2x2x1
jax: 0.10.0
libtpu: 0.0.40
codegen_flags: <defaults>
</compile_context>

<pallas_src>
import functools

import jax
import jax.numpy as jnp
from jax.experimental import pallas as pl
from jax.experimental.pallas import tpu as pltpu

EPS = 1e-5
D_IN = 2 * 17 * 2      # 68
D_HALF = 17 * 2        # 34 (per pose tensor)
D_HID = 128
N_PAD = 128            # lane-dense padded output width

# Slab layout (rows, all section starts on 8-row boundaries), 128 lanes wide:
R_W1A = 0              # [0, 34)   w1[:34]      (padded region to 40)
R_W1B = 40             # [40, 74)  w1[34:]      (padded region to 80)
R_W2 = 80              # [80, 208) w2
R_W3 = 208             # [208,336) w3 zero-padded to 128 out lanes
R_AUX = 336            # [336,344) rows: g1, be1, g2, be2, b3_pad, 0, 0, 0
SLAB_ROWS = 344


def _bn_train_fused(h, gamma, beta, inv_b):
    """Train-mode BatchNorm1d, one-pass stats + folded affine.

    sum and sum-of-squares are independent XLU reductions; the affine is folded
    into a single per-feature (scale, shift) so the full-width math is just
    h * scale + shift.
    """
    s = jnp.sum(h, axis=0, keepdims=True)
    sq = jnp.sum(h * h, axis=0, keepdims=True)
    mean = s * inv_b
    var = sq * inv_b - mean * mean            # biased variance (PyTorch train mode)
    scale = gamma * jax.lax.rsqrt(var + EPS)
    shift = beta - mean * scale
    return h * scale + shift


def fully_connect_kernel(x1_ref, x2_ref, slab_ref, o_ref, *, inv_b, bf16):
    md = jnp.bfloat16 if bf16 else jnp.float32

    x1 = x1_ref[...].astype(md)
    x2 = x2_ref[...].astype(md)

    # Static slices into the packed parameter slab.
    w1a = slab_ref[R_W1A:R_W1A + D_HALF, :].astype(md)
    w1b = slab_ref[R_W1B:R_W1B + D_HALF, :].astype(md)
    w2 = slab_ref[R_W2:R_W2 + D_HID, :]
    w3 = slab_ref[R_W3:R_W3 + D_HID, :]
    g1 = slab_ref[R_AUX + 0:R_AUX + 1, :]
    be1 = slab_ref[R_AUX + 1:R_AUX + 2, :]
    g2 = slab_ref[R_AUX + 2:R_AUX + 3, :]
    be2 = slab_ref[R_AUX + 3:R_AUX + 4, :]
    b3 = slab_ref[R_AUX + 4:R_AUX + 5, :]

    # linear1 (bias dropped: exactly cancelled by train-mode BN) -> bn1 -> relu
    h = (jnp.dot(x1, w1a, preferred_element_type=jnp.float32)
         + jnp.dot(x2, w1b, preferred_element_type=jnp.float32))
    h = _bn_train_fused(h, g1, be1, inv_b)
    h = jnp.maximum(h, 0.0)

    # linear2 (bias dropped) -> bn2 -> relu
    h = jnp.dot(h.astype(md), w2.astype(md), preferred_element_type=jnp.float32)
    h = _bn_train_fused(h, g2, be2, inv_b)
    h = jnp.maximum(h, 0.0)

    # linear3 -> lane-dense (B, 128) output (unmasked 128-lane stores)
    o_ref[...] = (jnp.dot(h.astype(md), w3.astype(md),
                          preferred_element_type=jnp.float32)
                  + b3).astype(o_ref.dtype)


def pack_params(params):
    """One-time parameter packing (do this at init / cache on param identity).

    Returns (slab, action_num).  slab is a single (344, 128) f32 array holding
    w1 (split + padded), w2, lane-padded w3, and the packed aux rows
    [g1, be1, g2, be2, b3_pad].  b1/b2 are dropped (cancelled by train-mode BN).
    """
    (w1, b1, g1, be1, w2, b2, g2, be2, w3, b3) = params
    del b1, b2
    action_num = w3.shape[1]

    pad6 = jnp.zeros((6, D_HID), jnp.float32)
    w1a = jnp.concatenate([w1[:D_HALF, :], pad6], axis=0)            # (40, 128)
    w1b = jnp.concatenate([w1[D_HALF:, :], pad6], axis=0)            # (40, 128)
    w3p = jnp.zeros((D_HID, N_PAD), jnp.float32).at[:, :action_num].set(w3)
    b3p = jnp.zeros((1, N_PAD), jnp.float32).at[:, :action_num].set(b3)
    aux = jnp.concatenate(
        [g1, be1, g2, be2, b3p, jnp.zeros((3, N_PAD), jnp.float32)], axis=0)  # (8,128)

    slab = jnp.concatenate([w1a, w1b, w2, w3p, aux], axis=0)          # (344, 128)
    assert slab.shape == (SLAB_ROWS, N_PAD)
    return slab, action_num


@functools.partial(jax.jit, static_argnames=("action_num", "bf16_matmul"))
def fully_connect_forward(x1, x2, slab, action_num, bf16_matmul=False):
    """x1, x2: (B, 17, 2) float32; slab from pack_params. Returns (B, action_num)."""
    B = x1.shape[0]
    x1f = x1.reshape(B, -1)    # (B, 34) — contiguous reshape, no HBM copy
    x2f = x2.reshape(B, -1)    # (B, 34)

    flops = 2 * B * (2 * D_HALF * D_HID + D_HID * D_HID + D_HID * N_PAD) \
        + 8 * B * D_HID
    bytes_accessed = 4 * (2 * B * D_HALF + SLAB_ROWS * N_PAD + B * N_PAD)

    vmem = pl.BlockSpec(memory_space=pltpu.MemorySpace.VMEM)
    kernel = functools.partial(fully_connect_kernel,
                               inv_b=1.0 / B, bf16=bf16_matmul)
    out_pad = pl.pallas_call(
        kernel,
        out_shape=jax.ShapeDtypeStruct((B, N_PAD), jnp.float32),
        in_specs=[vmem, vmem, vmem],
        out_specs=vmem,
        cost_estimate=pl.CostEstimate(
            flops=flops, transcendentals=2 * D_HID, bytes_accessed=bytes_accessed),
    )(x1f, x2f, slab)

    return out_pad[:, :action_num]


def init_params(key, action_num):
    """Deterministic init.  Weights: (in, out); biases/affine: (1, out)."""
    ks = jax.random.split(key, 6)

    def lin(kw, kb, fan_in, fan_out):
        bound = 1.0 / jnp.sqrt(fan_in)
        w = jax.random.uniform(kw, (fan_in, fan_out), jnp.float32, -bound, bound)
        b = jax.random.uniform(kb, (1, fan_out), jnp.float32, -bound, bound)
        return w, b

    w1, b1 = lin(ks[0], ks[1], D_IN, D_HID)
    w2, b2 = lin(ks[2], ks[3], D_HID, D_HID)
    w3, b3 = lin(ks[4], ks[5], D_HID, action_num)
    g1 = jnp.ones((1, D_HID), jnp.float32)
    be1 = jnp.zeros((1, D_HID), jnp.float32)
    g2 = jnp.ones((1, D_HID), jnp.float32)
    be2 = jnp.zeros((1, D_HID), jnp.float32)
    return (w1, b1, g1, be1, w2, b2, g2, be2, w3, b3)


def _reference(x1, x2, params):
    """Pure-JAX reference mirroring the PyTorch forward (train-mode BN, drop=0),
    *including* the b1/b2 biases that the kernel drops (they cancel in BN)."""
    (w1, b1, g1, be1, w2, b2, g2, be2, w3, b3) = params
    B = x1.shape[0]

    def bn(h, gamma, beta):
        mean = jnp.mean(h, axis=0, keepdims=True)
        var = jnp.mean((h - mean) ** 2, axis=0, keepdims=True)
        return (h - mean) * jax.lax.rsqrt(var + EPS) * gamma + beta

    x = jnp.concatenate([x1.reshape(B, -1), x2.reshape(B, -1)], axis=1)
    h = x @ w1 + b1
    h = jnp.maximum(bn(h, g1, be1), 0.0)
    h = h @ w2 + b2
    h = jnp.maximum(bn(h, g2, be2), 0.0)
    return h @ w3 + b3


if __name__ == "__main__":
    key = jax.random.PRNGKey(0)
    k1, k2, kp = jax.random.split(key, 3)

    B, action_num = 8, 8
    x1 = jax.random.normal(k1, (B, 17, 2), jnp.float32)
    x2 = jax.random.normal(k2, (B, 17, 2), jnp.float32)
    params = init_params(kp, action_num)

    # One-time parameter packing (hoisted out of the hot path).
    slab, action_num = pack_params(params)
    slab = jax.block_until_ready(slab)

    # f32 path (default): must match the f32 reference tightly.
    out = fully_connect_forward(x1, x2, slab, action_num)
    out = jax.block_until_ready(out)

    ref = _reference(x1, x2, params)
    assert out.shape == (B, action_num)
    assert jnp.allclose(out, ref, atol=1e-4, rtol=1e-4), "mismatch vs reference"

    # bf16 MXU-operand throughput path (for large B on v6e/v7x): looser numerics
    # by design; checked with a relaxed tolerance.
    out_bf16 = fully_connect_forward(x1, x2, slab, action_num, bf16_matmul=True)
    out_bf16 = jax.block_until_ready(out_bf16)
    assert out_bf16.shape == (B, action_num)
    assert bool(jnp.all(jnp.isfinite(out_bf16)))
    assert jnp.allclose(out_bf16, ref, atol=2e-1, rtol=1e-1), "bf16 path diverged"

    print("KERNEL_OK")
</pallas_src>

<mosaic_0001>
module attributes {stable_mosaic.version = 11 : i64} {
  func.func @fully_connect_kernel(%arg0: memref<8x34xf32, #tpu.memory_space<vmem>>, %arg1: memref<8x34xf32, #tpu.memory_space<vmem>>, %arg2: memref<344x128xf32, #tpu.memory_space<vmem>>, %arg3: memref<8x128xf32, #tpu.memory_space<vmem>>) attributes {dimension_semantics = [], scalar_prefetch = 0 : i64, scratch_operands = 0 : i64, tpu.core_type = #tpu.core_type<tc>} {
    %c0 = arith.constant 0 : index
    %c0_0 = arith.constant 0 : index
    %0 = vector.load %arg0[%c0, %c0_0] : memref<8x34xf32, #tpu.memory_space<vmem>>, vector<8x34xf32>
    %c0_1 = arith.constant 0 : index
    %c0_2 = arith.constant 0 : index
    %1 = vector.load %arg1[%c0_1, %c0_2] : memref<8x34xf32, #tpu.memory_space<vmem>>, vector<8x34xf32>
    %c0_3 = arith.constant 0 : index
    %c0_4 = arith.constant 0 : index
    %2 = vector.load %arg2[%c0_3, %c0_4] : memref<344x128xf32, #tpu.memory_space<vmem>>, vector<34x128xf32>
    %c40 = arith.constant 40 : index
    %c0_5 = arith.constant 0 : index
    %3 = vector.load %arg2[%c40, %c0_5] : memref<344x128xf32, #tpu.memory_space<vmem>>, vector<34x128xf32>
    %c80 = arith.constant 80 : index
    %c0_6 = arith.constant 0 : index
    %4 = vector.load %arg2[%c80, %c0_6] : memref<344x128xf32, #tpu.memory_space<vmem>>, vector<128x128xf32>
    %c208 = arith.constant 208 : index
    %c0_7 = arith.constant 0 : index
    %5 = vector.load %arg2[%c208, %c0_7] : memref<344x128xf32, #tpu.memory_space<vmem>>, vector<128x128xf32>
    %c336 = arith.constant 336 : index
    %c0_8 = arith.constant 0 : index
    %6 = vector.load %arg2[%c336, %c0_8] : memref<344x128xf32, #tpu.memory_space<vmem>>, vector<1x128xf32>
    %c337 = arith.constant 337 : index
    %c0_9 = arith.constant 0 : index
    %7 = vector.load %arg2[%c337, %c0_9] : memref<344x128xf32, #tpu.memory_space<vmem>>, vector<1x128xf32>
    %c338 = arith.constant 338 : index
    %c0_10 = arith.constant 0 : index
    %8 = vector.load %arg2[%c338, %c0_10] : memref<344x128xf32, #tpu.memory_space<vmem>>, vector<1x128xf32>
    %c339 = arith.constant 339 : index
    %c0_11 = arith.constant 0 : index
    %9 = vector.load %arg2[%c339, %c0_11] : memref<344x128xf32, #tpu.memory_space<vmem>>, vector<1x128xf32>
    %c340 = arith.constant 340 : index
    %c0_12 = arith.constant 0 : index
    %10 = vector.load %arg2[%c340, %c0_12] : memref<344x128xf32, #tpu.memory_space<vmem>>, vector<1x128xf32>
    %cst = arith.constant dense<0.000000e+00> : vector<8x128xf32>
    %11 = tpu.matmul %0, %2, %cst {dimension_numbers = #tpu.dot_dimension_numbers<[1], [0], [0], [1], [0, 0, 1, 1], [], []>} : vector<8x34xf32>, vector<34x128xf32>, vector<8x128xf32> -> vector<8x128xf32>
    %cst_13 = arith.constant dense<0.000000e+00> : vector<8x128xf32>
    %12 = tpu.matmul %1, %3, %cst_13 {dimension_numbers = #tpu.dot_dimension_numbers<[1], [0], [0], [1], [0, 0, 1, 1], [], []>} : vector<8x34xf32>, vector<34x128xf32>, vector<8x128xf32> -> vector<8x128xf32>
    %13 = arith.addf %11, %12 : vector<8x128xf32>
    %cst_14 = arith.constant dense<0.000000e+00> : vector<128xf32>
    %14 = vector.multi_reduction <add>, %13, %cst_14 [0] : vector<8x128xf32> to vector<128xf32>
    %15 = vector.shape_cast %14 : vector<128xf32> to vector<1x128xf32>
    %16 = arith.mulf %13, %13 : vector<8x128xf32>
    %cst_15 = arith.constant dense<0.000000e+00> : vector<128xf32>
    %17 = vector.multi_reduction <add>, %16, %cst_15 [0] : vector<8x128xf32> to vector<128xf32>
    %18 = vector.shape_cast %17 : vector<128xf32> to vector<1x128xf32>
    %cst_16 = arith.constant 1.250000e-01 : f32
    %19 = vector.broadcast %cst_16 : f32 to vector<1x128xf32>
    %20 = arith.mulf %15, %19 : vector<1x128xf32>
    %cst_17 = arith.constant 1.250000e-01 : f32
    %21 = vector.broadcast %cst_17 : f32 to vector<1x128xf32>
    %22 = arith.mulf %18, %21 : vector<1x128xf32>
    %23 = arith.mulf %20, %20 : vector<1x128xf32>
    %24 = arith.subf %22, %23 : vector<1x128xf32>
    %cst_18 = arith.constant 9.99999974E-6 : f32
    %25 = vector.broadcast %cst_18 : f32 to vector<1x128xf32>
    %26 = arith.addf %24, %25 : vector<1x128xf32>
    %27 = math.rsqrt %26 : vector<1x128xf32>
    %28 = arith.mulf %6, %27 : vector<1x128xf32>
    %29 = arith.mulf %20, %28 : vector<1x128xf32>
    %30 = arith.subf %7, %29 : vector<1x128xf32>
    %31 = vector.broadcast %28 : vector<1x128xf32> to vector<8x128xf32>
    %32 = arith.mulf %13, %31 : vector<8x128xf32>
    %33 = vector.broadcast %30 : vector<1x128xf32> to vector<8x128xf32>
    %34 = arith.addf %32, %33 : vector<8x128xf32>
    %cst_19 = arith.constant 0.000000e+00 : f32
    %35 = vector.broadcast %cst_19 : f32 to vector<8x128xf32>
    %36 = arith.maximumf %34, %35 : vector<8x128xf32>
    %cst_20 = arith.constant dense<0.000000e+00> : vector<8x128xf32>
    %37 = tpu.matmul %36, %4, %cst_20 {dimension_numbers = #tpu.dot_dimension_numbers<[1], [0], [0], [1], [0, 0, 1, 1], [], []>} : vector<8x128xf32>, vector<128x128xf32>, vector<8x128xf32> -> vector<8x128xf32>
    %cst_21 = arith.constant dense<0.000000e+00> : vector<128xf32>
    %38 = vector.multi_reduction <add>, %37, %cst_21 [0] : vector<8x128xf32> to vector<128xf32>
    %39 = vector.shape_cast %38 : vector<128xf32> to vector<1x128xf32>
    %40 = arith.mulf %37, %37 : vector<8x128xf32>
    %cst_22 = arith.constant dense<0.000000e+00> : vector<128xf32>
    %41 = vector.multi_reduction <add>, %40, %cst_22 [0] : vector<8x128xf32> to vector<128xf32>
    %42 = vector.shape_cast %41 : vector<128xf32> to vector<1x128xf32>
    %cst_23 = arith.constant 1.250000e-01 : f32
    %43 = vector.broadcast %cst_23 : f32 to vector<1x128xf32>
    %44 = arith.mulf %39, %43 : vector<1x128xf32>
    %cst_24 = arith.constant 1.250000e-01 : f32
    %45 = vector.broadcast %cst_24 : f32 to vector<1x128xf32>
    %46 = arith.mulf %42, %45 : vector<1x128xf32>
    %47 = arith.mulf %44, %44 : vector<1x128xf32>
    %48 = arith.subf %46, %47 : vector<1x128xf32>
    %cst_25 = arith.constant 9.99999974E-6 : f32
    %49 = vector.broadcast %cst_25 : f32 to vector<1x128xf32>
    %50 = arith.addf %48, %49 : vector<1x128xf32>
    %51 = math.rsqrt %50 : vector<1x128xf32>
    %52 = arith.mulf %8, %51 : vector<1x128xf32>
    %53 = arith.mulf %44, %52 : vector<1x128xf32>
    %54 = arith.subf %9, %53 : vector<1x128xf32>
    %55 = vector.broadcast %52 : vector<1x128xf32> to vector<8x128xf32>
    %56 = arith.mulf %37, %55 : vector<8x128xf32>
    %57 = vector.broadcast %54 : vector<1x128xf32> to vector<8x128xf32>
    %58 = arith.addf %56, %57 : vector<8x128xf32>
    %cst_26 = arith.constant 0.000000e+00 : f32
    %59 = vector.broadcast %cst_26 : f32 to vector<8x128xf32>
    %60 = arith.maximumf %58, %59 : vector<8x128xf32>
    %cst_27 = arith.constant dense<0.000000e+00> : vector<8x128xf32>
    %61 = tpu.matmul %60, %5, %cst_27 {dimension_numbers = #tpu.dot_dimension_numbers<[1], [0], [0], [1], [0, 0, 1, 1], [], []>} : vector<8x128xf32>, vector<128x128xf32>, vector<8x128xf32> -> vector<8x128xf32>
    %62 = vector.broadcast %10 : vector<1x128xf32> to vector<8x128xf32>
    %63 = arith.addf %61, %62 : vector<8x128xf32>
    %c0_28 = arith.constant 0 : index
    %c0_29 = arith.constant 0 : index
    %64 = vector.load %arg3[%c0_28, %c0_29] : memref<8x128xf32, #tpu.memory_space<vmem>>, vector<8x128xf32>
    tpu.vector_store %arg3[%c0_28, %c0_29], %63 {strides = array<i32>} : memref<8x128xf32, #tpu.memory_space<vmem>>, vector<8x128xf32>,
    return
  }
}

</mosaic_0001>

<bundles_post_ra>
// kernel: fully_connect_forward.1
= control target key start
LH: loop header
LB: loop body
LE: loop exit
PB: predicated region body
PF: predicated region fallthrough
CT: control target
= control target key end

     0   :  { %vm68_vm0 = vcmask 1041408   ;;  %v619_v2 = vmov 0.0   ;;  %s844_s0 = inlined_call_operand.vmem [shape: f32[8,34], index: 0, kind: input, shape index: {}]   ;;  %s845_s1 = inlined_call_operand.vmem [shape: f32[8,34], index: 1, kind: input, shape index: {}]   ;;  %s846_s2 = inlined_call_operand.vmem [shape: f32[344,128], index: 2, kind: input, shape index: {}]   ;;  %s847_s3 = inlined_call_operand.hbm [shape: f32[8,128], index: 3, kind: output, shape index: {}]  }
   0x1   :  { %v26_v0 = vld [vmem:[%s846_s2 + $0x48] sm:$0x3]  ;;  %v21_v1 = vld [vmem:[%s846_s2 + $0x20] sm:$0x3]  ;;  %494 = vmatprep.subr.mxu0 %v619_v2  ;;  %507 = vmatprep.subr.mxu1 %v619_v2  ;;  %v20_v4 = vld [vmem:[%s846_s2 + $0x18] sm:$0xff] }
   0x2   :  { %v25_v3 = vld [vmem:[%s846_s2 + $0x40] sm:$0xff]  ;;  %495 = vmatpush3.msk.msra.mxu0 %vm68_vm0, %v26_v0  ;;  %508 = vmatpush3.msk.msra.mxu1 %vm68_vm0, %v21_v1  ;;  %v24_v5 = vld [vmem:[%s846_s2 + $0x38] sm:$0xff]  ;;  %v19_v6 = vld [vmem:[%s846_s2 + $0x10] sm:$0xff] }
   0x3   :  { %496 = vmatprep.subr.mxu0 %v619_v2  ;;  %509 = vmatprep.subr.mxu1 %v619_v2 }
   0x4   :  { %497 = vmatpush3.msra.mxu0 %v25_v3  ;;  %510 = vmatpush3.msra.mxu1 %v20_v4 }
   0x5   :  { %8 = vsyncpa [#allocation3], 0  ;;  %498 = vmatprep.subr.mxu0 %v619_v2  ;;  %511 = vmatprep.subr.mxu1 %v619_v2  ;;  %v23_v7 = vld [vmem:[%s846_s2 + $0x30] sm:$0xff]  ;;  %v18_v8 = vld [vmem:[%s846_s2 + $0x8] sm:$0xff]  ;;  %vm64_vm1 = vcmask 277504   ;;  %vm620_vm2 = vmmov 0   ;;  %v240_v52 = vlaneseq }
   0x6   :  { %499 = vmatpush3.msra.mxu0 %v24_v5  ;;  %512 = vmatpush3.msra.mxu1 %v19_v6  ;;  %v22_v9 = vld [vmem:[%s846_s2 + $0x28] sm:$0xff]  ;;  %v17_v10 = vld [vmem:[%s846_s2] sm:$0xff]  ;;  %v40_v15 = vld [vmem:[%s846_s2 + $0xb8] sm:$0xff]  ;;  %s621_s23 = smov [#allocation2]  }
   0x7   :  { %500 = vmatprep.subr.mxu0 %v619_v2  ;;  %513 = vmatprep.subr.mxu1 %v619_v2  ;;  %v16_v11 = vld [vmem:[%s845_s1] sm:$0xff]  ;;  %v42_v13 = vld [vmem:[%s846_s2 + $0xc8] sm:$0xff]  ;;  %v39_v16 = vld [vmem:[%s846_s2 + $0xb0] sm:$0xff]  ;;  %v241_v53 = vshrl.u32 %v240_v52, 7  ;;  %s435_s24 = sshll.u32 %s621_s23, 4  ;;  %s436_s24 = int_to_ptr.vmem [resolvable:$true] %s435_s24 }
   0x8   :  { %501 = vmatpush3.msra.mxu0 %v23_v7  ;;  %514 = vmatpush3.msra.mxu1 %v18_v8  ;;  %v15_v12 = vld [vmem:[%s844_s0] sm:$0xff]  ;;  %v38_v17 = vld [vmem:[%s846_s2 + $0xa8] sm:$0xff]  ;;  %v36_v19 = vld [vmem:[%s846_s2 + $0x98] sm:$0xff]  ;;  %s597_s25 = scalar_lea.vmem %s436_s24, 128  ;;  %p602_p1 = scmp.lt.s32.totalorder %s436_s24, %s436_s24 }
   0x9   :  { %502 = vmatprep.subr.mxu0 %v619_v2  ;;  %515 = vmatprep.subr.mxu1 %v619_v2  ;;  %v41_v14 = vld [vmem:[%s846_s2 + $0xc0] sm:$0xff]  ;;  %v35_v20 = vld [vmem:[%s846_s2 + $0x90] sm:$0xff]  ;;  %v34_v21 = vld [vmem:[%s846_s2 + $0x88] sm:$0xff]  ;;  %v760_v55 = vsub.s32 0, %v241_v53  ;;  %p598_p0 = scmp.ne.s32.totalorder %s436_s24, %s597_s25  ;;  %p603_p2 = scmp.lt.s32.totalorder %s597_s25, %s597_s25 }
   0xa   :  { %503 = vmatpush3.msra.mxu0 %v22_v9  ;;  %504 = vmatprep.mubr.msk.f32.mxu0 %vm620_vm2, %v619_v2  ;;  %v37_v18 = vld [vmem:[%s846_s2 + $0xa0] sm:$0xff]  ;;  %v32_v23 = vld [vmem:[%s846_s2 + $0x78] sm:$0xff]  ;;  %v31_v24 = vld [vmem:[%s846_s2 + $0x70] sm:$0xff] }
   0xb   :  { %516 = vmatpush3.msra.mxu1 %v17_v10  ;;  %517 = vmatprep.mubr.msk.f32.mxu1 %vm620_vm2, %v619_v2  ;;  %v33_v22 = vld [vmem:[%s846_s2 + $0x80] sm:$0xff]  ;;  %v30_v25 = vld [vmem:[%s846_s2 + $0x68] sm:$0xff]  ;;  %v28_v27 = vld [vmem:[%s846_s2 + $0x58] sm:$0xff]  ;;  %p604_p3 = por %p603_p2, %p602_p1 }
   0xc   :  { %505 = vmatmul.mubr.msk.f32.vlgmr.msra.gmra.mxu0 %vm64_vm1, %v16_v11  ;;  %518 = vmatmul.mubr.msk.f32.vlgmr.msra.gmra.mxu1 %vm64_vm1, %v15_v12  ;;  %v29_v26 = vld [vmem:[%s846_s2 + $0x60] sm:$0xff]  ;;  %v27_v28 = vld [vmem:[%s846_s2 + $0x50] sm:$0xff]  ;;  %v58_v3 = vld [vmem:[%s846_s2 + $0x148] sm:$0xff] }
   0xd   :  { %520 = vmatprep.subr.mxu0 %v619_v2  ;;  %552 = vmatprep.mubr.msk.f32.mxu0 %vm620_vm2, %v619_v2  ;;  %v59_v54 = vld [vmem:[%s846_s2 + $0x150] sm:$0x1]  ;;  %v60_v58 = vld [vmem:[%s846_s2 + $0x151] sm:$0x1]  ;;  %v57_v4 = vld [vmem:[%s846_s2 + $0x140] sm:$0xff]  ;;  %p605_p4 = pnand %p604_p3, %p598_p0 }
   0xe   :  { %555 = vmatprep.subr.mxu1 %v619_v2  ;;  %587 = vmatprep.mubr.msk.f32.mxu1 %vm620_vm2, %v619_v2  ;;  %v56_v5 = vld [vmem:[%s846_s2 + $0x138] sm:$0xff]  ;;  %v55_v6 = vld [vmem:[%s846_s2 + $0x130] sm:$0xff]  ;;  %v54_v7 = vld [vmem:[%s846_s2 + $0x128] sm:$0xff] }
   0xf   :  { %521 = vmatpush3.msra.mxu0 %v42_v13  ;;  %556 = vmatpush3.msra.mxu1 %v58_v3  ;;  %v53_v8 = vld [vmem:[%s846_s2 + $0x120] sm:$0xff]  ;;  %v52_v9 = vld [vmem:[%s846_s2 + $0x118] sm:$0xff]  ;;  %v51_v10 = vld [vmem:[%s846_s2 + $0x110] sm:$0xff] }
  0x10   :  { %522 = vmatprep.subr.mxu0 %v619_v2  ;;  %557 = vmatprep.subr.mxu1 %v619_v2  ;;  %v50_v11 = vld [vmem:[%s846_s2 + $0x108] sm:$0xff]  ;;  %v49_v12 = vld [vmem:[%s846_s2 + $0x100] sm:$0xff]  ;;  %v48_v13 = vld [vmem:[%s846_s2 + $0xf8] sm:$0xff] }
  0x11   :  { %523 = vmatpush3.msra.mxu0 %v41_v14  ;;  %558 = vmatpush3.msra.mxu1 %v57_v4  ;;  %v47_v14 = vld [vmem:[%s846_s2 + $0xf0] sm:$0xff] }
  0x12   :  { %524 = vmatprep.subr.mxu0 %v619_v2  ;;  %559 = vmatprep.subr.mxu1 %v619_v2 }
  0x13   :  { %525 = vmatpush3.msra.mxu0 %v40_v15  ;;  %560 = vmatpush3.msra.mxu1 %v56_v5  ;;  %v46_v15 = vld [vmem:[%s846_s2 + $0xe8] sm:$0xff] }
  0x14   :  { %526 = vmatprep.subr.mxu0 %v619_v2  ;;  %561 = vmatprep.subr.mxu1 %v619_v2 }
  0x15   :  { %527 = vmatpush3.msra.mxu0 %v39_v16  ;;  %562 = vmatpush3.msra.mxu1 %v55_v6  ;;  %v45_v16 = vld [vmem:[%s846_s2 + $0xe0] sm:$0xff] }
  0x16   :  { %528 = vmatprep.subr.mxu0 %v619_v2  ;;  %563 = vmatprep.subr.mxu1 %v619_v2 }
  0x17   :  { %529 = vmatpush3.msra.mxu0 %v38_v17  ;;  %564 = vmatpush3.msra.mxu1 %v54_v7  ;;  %v44_v17 = vld [vmem:[%s846_s2 + $0xd8] sm:$0xff] }
  0x18   :  { %530 = vmatprep.subr.mxu0 %v619_v2  ;;  %565 = vmatprep.subr.mxu1 %v619_v2 }
  0x19   :  { %531 = vmatpush3.msra.mxu0 %v37_v18  ;;  %566 = vmatpush3.msra.mxu1 %v53_v8  ;;  %v43_v18 = vld [vmem:[%s846_s2 + $0xd0] sm:$0xff] }
  0x1a   :  { %532 = vmatprep.subr.mxu0 %v619_v2  ;;  %567 = vmatprep.subr.mxu1 %v619_v2 }
  0x1b   :  { %533 = vmatpush3.msra.mxu0 %v36_v19  ;;  %568 = vmatpush3.msra.mxu1 %v52_v9 }
  0x1c   :  { %534 = vmatprep.subr.mxu0 %v619_v2  ;;  %569 = vmatprep.subr.mxu1 %v619_v2 }
  0x1d   :  { %535 = vmatpush3.msra.mxu0 %v35_v20  ;;  %570 = vmatpush3.msra.mxu1 %v51_v10 }
  0x1e   :  { %536 = vmatprep.subr.mxu0 %v619_v2  ;;  %571 = vmatprep.subr.mxu1 %v619_v2 }
  0x1f   :  { %537 = vmatpush3.msra.mxu0 %v34_v21  ;;  %572 = vmatpush3.msra.mxu1 %v50_v11 }
  0x20   :  { %538 = vmatprep.subr.mxu0 %v619_v2  ;;  %573 = vmatprep.subr.mxu1 %v619_v2 }
  0x21   :  { %539 = vmatpush3.msra.mxu0 %v33_v22  ;;  %574 = vmatpush3.msra.mxu1 %v49_v12 }
  0x22   :  { %540 = vmatprep.subr.mxu0 %v619_v2  ;;  %575 = vmatprep.subr.mxu1 %v619_v2 }
  0x23   :  { %541 = vmatpush3.msra.mxu0 %v32_v23  ;;  %576 = vmatpush3.msra.mxu1 %v48_v13 }
  0x24   :  { %542 = vmatprep.subr.mxu0 %v619_v2  ;;  %577 = vmatprep.subr.mxu1 %v619_v2 }
  0x25   :  { %543 = vmatpush3.msra.mxu0 %v31_v24  ;;  %578 = vmatpush3.msra.mxu1 %v47_v14 }
  0x26   :  { %544 = vmatprep.subr.mxu0 %v619_v2  ;;  %579 = vmatprep.subr.mxu1 %v619_v2 }
  0x27   :  { %545 = vmatpush3.msra.mxu0 %v30_v25  ;;  %580 = vmatpush3.msra.mxu1 %v46_v15 }
  0x28   :  { %546 = vmatprep.subr.mxu0 %v619_v2  ;;  %581 = vmatprep.subr.mxu1 %v619_v2 }
  0x29   :  { %547 = vmatpush3.msra.mxu0 %v29_v26  ;;  %582 = vmatpush3.msra.mxu1 %v45_v16 }
  0x2a   :  { %548 = vmatprep.subr.mxu0 %v619_v2  ;;  %583 = vmatprep.subr.mxu1 %v619_v2 }
  0x2b   :  { %549 = vmatpush3.msra.mxu0 %v28_v27  ;;  %584 = vmatpush3.msra.mxu1 %v44_v17 }
  0x2c   :  { %550 = vmatprep.subr.mxu0 %v619_v2  ;;  %585 = vmatprep.subr.mxu1 %v619_v2 }
  0x2d   :  { %551 = vmatpush3.msra.mxu0 %v27_v28  ;;  %586 = vmatpush3.msra.mxu1 %v43_v18 }
  0xcc   :  { %v138_v29 = vpop.f32.mrf.mxu0  ;;  %v214_v30 = vpop.f32.mrf.mxu1 }
  0xcd   :  { %v215_v31 = vadd.f32 %v214_v30, %v138_v29 }
  0xce   :  { %v506_v32 = vpop.f32.mrf.mxu0  ;;  %v519_v33 = vpop.f32.mrf.mxu1 }
  0xcf   :  { %v218_v34 = vrot.slane %v215_v31, 4  ;;  %v224_v35 = vmul.f32 %v215_v31, %v215_v31 }
  0xd1   :  { %v219_v36 = vadd.f32 %v218_v34, %v215_v31  ;;  %v225_v37 = vrot.slane %v224_v35, 4 }
  0xd3   :  { %v220_v38 = vrot.slane %v219_v36, 2  ;;  %v226_v39 = vadd.f32 %v225_v37, %v224_v35 }
  0xd5   :  { %v221_v40 = vadd.f32 %v220_v38, %v219_v36  ;;  %v227_v41 = vrot.slane %v226_v39, 2  ;;  %v61_v38 = vld [vmem:[%s846_s2 + $0x152] sm:$0x1] }
  0xd7   :  { %v222_v42 = vrot.slane %v221_v40, 1  ;;  %v228_v43 = vadd.f32 %v227_v41, %v226_v39  ;;  %v62_v41 = vld [vmem:[%s846_s2 + $0x153] sm:$0x1] }
  0xd9   :  { %v223_v44 = vadd.f32 %v222_v42, %v221_v40  ;;  %v229_v45 = vrot.slane %v228_v43, 1 }
  0xdb   :  { %v230_v46 = vadd.f32 %v229_v45, %v228_v43  ;;  %v231_v47 = vmul.f32 0.125, %v223_v44 }
  0xdd   :  { %v232_v48 = vmul.f32 0.125, %v230_v46  ;;  %v233_v49 = vmul.f32 %v231_v47, %v231_v47 }
  0xdf   :  { %v234_v50 = vsub.f32 %v232_v48, %v233_v49  ;;  %v447_v49 = vld [vmem:[%s846_s2 + $0x154] ss:$0 sm:$0xff] }
  0xe1   :  { %v235_v51 = vadd.f32 1e-05, %v234_v50 }
  0xe3   :  { %593 = vrsqrt.f32 %v235_v51 }
  0xf0   :  { %v594_v56 = vpop.eup %593 }
  0xf1   :  { %v237_v57 = vmul.f32 %v594_v56, %v59_v54 }
  0xf3   :  { %v243_v59 = vrot.slane %v237_v57, %v760_v55  ;;  %v238_v60 = vmul.f32 %v237_v57, %v231_v47 }
  0xf5   :  { %v239_v61 = vsub.f32 %v60_v58, %v238_v60  ;;  %v244_v62 = vmul.f32 %v243_v59, %v215_v31 }
  0xf7   :  { %v248_v63 = vrot.slane %v239_v61, %v760_v55 }
  0xf9   :  { %v249_v0 = vadd.f32 %v248_v63, %v244_v62 }
  0xfb   :  { %v250_v1 = vmax.f32 %v249_v0, 0.0 }
  0xfd   :  { %553 = vmatmul.mubr.f32.vlgmr.msra.gmra.mxu0 %v250_v1 }
 0x1bd   :  { %v317_v19 = vpop.f32.mrf.mxu0 }
 0x1be   :  { %v321_v20 = vrot.slane %v317_v19, 4  ;;  %v327_v21 = vmul.f32 %v317_v19, %v317_v19 }
 0x1bf   :  { %v554_v22 = vpop.f32.mrf.mxu0 }
 0x1c0   :  { %v322_v23 = vadd.f32 %v321_v20, %v317_v19  ;;  %v328_v24 = vrot.slane %v327_v21, 4 }
 0x1c2   :  { %v323_v25 = vrot.slane %v322_v23, 2  ;;  %v329_v26 = vadd.f32 %v328_v24, %v327_v21 }
 0x1c4   :  { %v324_v27 = vadd.f32 %v323_v25, %v322_v23  ;;  %v330_v28 = vrot.slane %v329_v26, 2 }
 0x1c6   :  { %v325_v29 = vrot.slane %v324_v27, 1  ;;  %v331_v30 = vadd.f32 %v330_v28, %v329_v26 }
 0x1c8   :  { %v326_v31 = vadd.f32 %v325_v29, %v324_v27  ;;  %v332_v32 = vrot.slane %v331_v30, 1 }
 0x1ca   :  { %v333_v33 = vadd.f32 %v332_v32, %v331_v30  ;;  %v334_v34 = vmul.f32 0.125, %v326_v31 }
 0x1cc   :  { %v335_v35 = vmul.f32 0.125, %v333_v33  ;;  %v336_v36 = vmul.f32 %v334_v34, %v334_v34 }
 0x1ce   :  { %v337_v2 = vsub.f32 %v335_v35, %v336_v36 }
 0x1d0   :  { %v338_v37 = vadd.f32 1e-05, %v337_v2 }
 0x1d2   :  { %595 = vrsqrt.f32 %v338_v37 }
 0x1df   :  { %v596_v39 = vpop.eup %595 }
 0x1e0   :  { %v340_v40 = vmul.f32 %v596_v39, %v61_v38 }
 0x1e2   :  { %v341_v42 = vmul.f32 %v340_v40, %v334_v34  ;;  %v346_v43 = vrot.slane %v340_v40, %v760_v55 }
 0x1e4   :  { %v342_v44 = vsub.f32 %v62_v41, %v341_v42  ;;  %v347_v45 = vmul.f32 %v346_v43, %v317_v19 }
 0x1e6   :  { %v351_v46 = vrot.slane %v342_v44, %v760_v55 }
 0x1e8   :  { %v352_v47 = vadd.f32 %v351_v46, %v347_v45 }
 0x1ea   :  { %v353_v48 = vmax.f32 %v352_v47, 0.0 }
 0x1ec   :  { %588 = vmatmul.mubr.f32.vlgmr.msra.gmra.mxu1 %v353_v48 }
 0x2ac   :  { %v424_v50 = vpop.f32.mrf.mxu1 }
 0x2ad   :  { %v425_v51 = vadd.f32 %v447_v49, %v424_v50 }
 0x2ae   :  { %v589_v52 = vpop.f32.mrf.mxu1 }
 0x2af   :  { %428 = vst [vmem:[#allocation2] sm:$0xff] %v425_v51 }
 0x2b0   :  { %608 = shalt.err (!%p605_p4)
}
 0x2b1   :  { %438 = dma.vmem_to_hbm [thread:$0]  %s436_s24, 128, %s847_s3, [#allocation3]  }
 0x2b2   :  { %617 = dma.done.wait [#allocation3], 128  }
 0x2b3   :  { %618 = vsyncadd [#allocation3], 4294967168 }
 0x2b4   :  { %442 = vsyncpa [#allocation3], 1 }

</bundles_post_ra>
